<compile_context>
chip_gen: v5e
topology: v5e:2x2
jax: 0.10.0
libtpu: 0.0.40
codegen_flags: <defaults>
</compile_context>

<pallas_src>
import functools

import jax
import jax.numpy as jnp
from jax.experimental import pallas as pl
from jax.experimental.pallas import tpu as pltpu

LANE = 128
BLOCK_R_MAX = 8192                 # 8192 x 128 f32 = 4 MiB per input tile
_SUBLANE = {4: 8, 2: 16, 1: 32}    # minimum sublane multiple per itemsize


def _round_up(x, m):
    return ((x + m - 1) // m) * m


def _fold8(v, block_r):
    """(block_r, LANE) f32 -> (8, LANE) lane/sublane-parallel partial sums."""
    return v.reshape(block_r // 8, 8, LANE).sum(axis=0)


def _dice_kernel(x_ref, t_ref, out_ref, *, block_r, num_blocks, nb_per,
                 rows_last, need_mask, exact_split):
    p = pl.program_id(0)              # parallel part (megacore split on v7x)
    b = pl.program_id(1)              # streaming block within the part
    g = p * nb_per + b                # global streaming-block index

    @pl.when(b == 0)
    def _():                          # zero this part's resident accumulator
        out_ref[...] = jnp.zeros_like(out_ref)

    def accumulate(masked):
        x = x_ref[...].astype(jnp.float32)
        t = t_ref[...].astype(jnp.float32)
        # sigmoid via EUP exp + exact reciprocal (frees VALU slots, exact).
        s = pl.reciprocal(1.0 + jnp.exp(-x), approx=False)
        st = s * t
        if masked:
            # Only the last real block is ragged: keep rows < rows_last.
            # A select (not mask-multiply) so stale VMEM garbage is discarded.
            row = jax.lax.broadcasted_iota(jnp.int32, (block_r, LANE), 0)
            keep = row < rows_last
            st = jnp.where(keep, st, 0.0)
            s = jnp.where(keep, s, 0.0)
            t = jnp.where(keep, t, 0.0)
        out_ref[0, 0] += _fold8(st, block_r)   # intersection partial
        out_ref[0, 1] += _fold8(s, block_r)    # sum(sigmoid(inputs)) partial
        out_ref[0, 2] += _fold8(t, block_r)    # sum(targets) partial

    if need_mask:
        # Mask only the last real block; full blocks take the cheap path.
        @pl.when(g < num_blocks - 1)
        def _():
            accumulate(masked=False)

        @pl.when(g == num_blocks - 1)
        def _():
            accumulate(masked=True)
    elif exact_split:
        accumulate(masked=False)
    else:
        @pl.when(g < num_blocks)      # skip the phantom block of an odd split
        def _():
            accumulate(masked=False)


def dice_loss(inputs, targets, smooth=1.0):
    """Pallas implementation of DiceLoss.forward(inputs, targets, smooth)."""
    x = inputs.reshape(-1)
    t = targets.reshape(-1)
    n = x.shape[0]

    rows = n // LANE                  # whole 128-lane rows streamed by kernel
    n_main = rows * LANE
    tail = n - n_main                 # < 128 leftover elems -> plain JAX below

    sums = jnp.zeros((3,), jnp.float32)

    if rows > 0:
        sub = max(_SUBLANE.get(jnp.dtype(x.dtype).itemsize, 8),
                  _SUBLANE.get(jnp.dtype(t.dtype).itemsize, 8))
        block_r = min(BLOCK_R_MAX, _round_up(rows, sub))
        num_blocks = pl.cdiv(rows, block_r)
        p_parts = 2 if num_blocks >= 2 else 1        # 2-way megacore split
        nb_per = pl.cdiv(num_blocks, p_parts)
        rows_last = rows - (num_blocks - 1) * block_r
        need_mask = rows_last != block_r
        exact_split = (p_parts * nb_per == num_blocks)

        xm = x if tail == 0 else x[:n_main]
        tm = t if tail == 0 else t[:n_main]
        x2 = xm.reshape(rows, LANE)
        t2 = tm.reshape(rows, LANE)

        if exact_split:
            in_idx = lambda pp, bb: (pp * nb_per + bb, 0)
        else:
            in_idx = lambda pp, bb: (jnp.minimum(pp * nb_per + bb,
                                                 num_blocks - 1), 0)

        kernel = functools.partial(
            _dice_kernel, block_r=block_r, num_blocks=num_blocks,
            nb_per=nb_per, rows_last=rows_last, need_mask=need_mask,
            exact_split=exact_split)

        partials = pl.pallas_call(
            kernel,
            out_shape=jax.ShapeDtypeStruct((p_parts, 3, 8, LANE), jnp.float32),
            grid_spec=pltpu.PrefetchScalarGridSpec(
                num_scalar_prefetch=0,
                grid=(p_parts, nb_per),
                in_specs=[pl.BlockSpec((block_r, LANE), in_idx),
                          pl.BlockSpec((block_r, LANE), in_idx)],
                out_specs=pl.BlockSpec((1, 3, 8, LANE),
                                       lambda pp, bb: (pp, 0, 0, 0)),
            ),
            compiler_params=pltpu.CompilerParams(
                dimension_semantics=("parallel", "arbitrary"),
                vmem_limit_bytes=48 * 1024 * 1024),
        )(x2, t2)

        sums = sums + jnp.sum(partials, axis=(0, 2, 3))   # accurate tree sum

    if tail:
        # <128 leftover elements: negligible plain-JAX work, avoids jnp.pad.
        xt = x[n_main:].astype(jnp.float32)
        tt = t[n_main:].astype(jnp.float32)
        st = jax.nn.sigmoid(xt)
        sums = sums + jnp.stack([jnp.sum(st * tt), jnp.sum(st), jnp.sum(tt)])

    smooth = jnp.float32(smooth)
    dice = (2.0 * sums[0] + smooth) / (sums[1] + sums[2] + smooth)
    return (1.0 - dice).astype(jnp.float32)


def _dice_loss_ref(inputs, targets, smooth=1.0):
    s = jax.nn.sigmoid(inputs.reshape(-1).astype(jnp.float32))
    t = targets.reshape(-1).astype(jnp.float32)
    inter = jnp.sum(s * t)
    dice = (2.0 * inter + smooth) / (jnp.sum(s) + jnp.sum(t) + smooth)
    return 1.0 - dice


if __name__ == "__main__":
    key = jax.random.PRNGKey(0)
    k1, k2 = jax.random.split(key)

    B, C, H, W = 2, 4, 16, 16
    # DiceLoss has no parameters (weight/size_average are unused in the ref).
    inputs = jax.random.normal(k1, (B, C, H, W), dtype=jnp.float32)   # logits
    targets = (jax.random.uniform(k2, (B, C, H, W)) > 0.5).astype(jnp.float32)

    loss = jax.block_until_ready(dice_loss(inputs, targets, smooth=1.0))
    ref = jax.block_until_ready(_dice_loss_ref(inputs, targets, smooth=1.0))

    assert jnp.allclose(loss, ref, rtol=1e-5, atol=1e-5), (loss, ref)
    print("KERNEL_OK")
</pallas_src>

<mosaic_0001>
module attributes {stable_mosaic.version = 11 : i64} {
  func.func @_dice_kernel(%arg0: i32, %arg1: i32, %arg2: memref<16x128xf32, #tpu.memory_space<vmem>>, %arg3: memref<16x128xf32, #tpu.memory_space<vmem>>, %arg4: memref<1x3x8x128xf32, #tpu.memory_space<vmem>>) attributes {dimension_semantics = [#tpu.dimension_semantics<parallel>, #tpu.dimension_semantics<arbitrary>], iteration_bounds = array<i64: 1, 1>, scalar_prefetch = 0 : i64, scratch_operands = 0 : i64, tpu.core_type = #tpu.core_type<tc>, window_params = [{transform_indices = @transform_0, window_bounds = array<i64: 16, 128>}, {transform_indices = @transform_1, window_bounds = array<i64: 16, 128>}, {transform_indices = @transform_2, window_bounds = array<i64: 1, 3, 8, 128>}]} {
    %c0_i32 = arith.constant 0 : i32
    %0 = arith.cmpi eq, %arg1, %c0_i32 : i32
    %1 = arith.extui %0 : i1 to i32
    %c0_i32_0 = arith.constant 0 : i32
    %2 = arith.cmpi ne, %1, %c0_i32_0 : i32
    scf.if %2 {
      %cst_30 = arith.constant 0.000000e+00 : f32
      %36 = vector.broadcast %cst_30 : f32 to vector<1x3x8x128xf32>
      %c0_31 = arith.constant 0 : index
      %c0_32 = arith.constant 0 : index
      %c0_33 = arith.constant 0 : index
      %c0_34 = arith.constant 0 : index
      %37 = vector.load %arg4[%c0_31, %c0_32, %c0_33, %c0_34] : memref<1x3x8x128xf32, #tpu.memory_space<vmem>>, vector<1x3x8x128xf32>
      tpu.vector_store %arg4[%c0_31, %c0_32, %c0_33, %c0_34], %36 {strides = array<i32>} : memref<1x3x8x128xf32, #tpu.memory_space<vmem>>, vector<1x3x8x128xf32>,
    } else {
    }
    %c0 = arith.constant 0 : index
    %c0_1 = arith.constant 0 : index
    %3 = vector.load %arg2[%c0, %c0_1] : memref<16x128xf32, #tpu.memory_space<vmem>>, vector<16x128xf32>
    %c0_2 = arith.constant 0 : index
    %c0_3 = arith.constant 0 : index
    %4 = vector.load %arg3[%c0_2, %c0_3] : memref<16x128xf32, #tpu.memory_space<vmem>>, vector<16x128xf32>
    %cst = arith.constant 0.000000e+00 : f32
    %5 = vector.broadcast %cst : f32 to vector<16x128xf32>
    %6 = arith.subf %5, %3 : vector<16x128xf32>
    %7 = math.exp %6 : vector<16x128xf32>
    %cst_4 = arith.constant 1.000000e+00 : f32
    %8 = vector.broadcast %cst_4 : f32 to vector<16x128xf32>
    %9 = arith.addf %8, %7 : vector<16x128xf32>
    %10 = tpu.reciprocal %9 : vector<16x128xf32> -> vector<16x128xf32>
    %11 = arith.mulf %10, %4 : vector<16x128xf32>
    %c0_5 = arith.constant 0 : index
    %c0_6 = arith.constant 0 : index
    %c0_7 = arith.constant 0 : index
    %c0_8 = arith.constant 0 : index
    %12 = vector.load %arg4[%c0_5, %c0_6, %c0_7, %c0_8] : memref<1x3x8x128xf32, #tpu.memory_space<vmem>>, vector<1x1x8x128xf32>
    %13 = vector.shape_cast %12 : vector<1x1x8x128xf32> to vector<8x128xf32>
    %14 = vector.shape_cast %11 : vector<16x128xf32> to vector<2x8x128xf32>
    %cst_9 = arith.constant dense<0.000000e+00> : vector<8x128xf32>
    %15 = vector.multi_reduction <add>, %14, %cst_9 [0] : vector<2x8x128xf32> to vector<8x128xf32>
    %16 = arith.addf %13, %15 : vector<8x128xf32>
    %c0_10 = arith.constant 0 : index
    %c0_11 = arith.constant 0 : index
    %c0_12 = arith.constant 0 : index
    %c0_13 = arith.constant 0 : index
    %17 = vector.load %arg4[%c0_10, %c0_11, %c0_12, %c0_13] : memref<1x3x8x128xf32, #tpu.memory_space<vmem>>, vector<1x1x8x128xf32>
    %18 = vector.shape_cast %17 : vector<1x1x8x128xf32> to vector<8x128xf32>
    %19 = vector.shape_cast %16 : vector<8x128xf32> to vector<1x1x8x128xf32>
    tpu.vector_store %arg4[%c0_10, %c0_11, %c0_12, %c0_13], %19 {strides = array<i32>} : memref<1x3x8x128xf32, #tpu.memory_space<vmem>>, vector<1x1x8x128xf32>,
    %c0_14 = arith.constant 0 : index
    %c1 = arith.constant 1 : index
    %c0_15 = arith.constant 0 : index
    %c0_16 = arith.constant 0 : index
    %20 = vector.load %arg4[%c0_14, %c1, %c0_15, %c0_16] : memref<1x3x8x128xf32, #tpu.memory_space<vmem>>, vector<1x1x8x128xf32>
    %21 = vector.shape_cast %20 : vector<1x1x8x128xf32> to vector<8x128xf32>
    %22 = vector.shape_cast %10 : vector<16x128xf32> to vector<2x8x128xf32>
    %cst_17 = arith.constant dense<0.000000e+00> : vector<8x128xf32>
    %23 = vector.multi_reduction <add>, %22, %cst_17 [0] : vector<2x8x128xf32> to vector<8x128xf32>
    %24 = arith.addf %21, %23 : vector<8x128xf32>
    %c0_18 = arith.constant 0 : index
    %c1_19 = arith.constant 1 : index
    %c0_20 = arith.constant 0 : index
    %c0_21 = arith.constant 0 : index
    %25 = vector.load %arg4[%c0_18, %c1_19, %c0_20, %c0_21] : memref<1x3x8x128xf32, #tpu.memory_space<vmem>>, vector<1x1x8x128xf32>
    %26 = vector.shape_cast %25 : vector<1x1x8x128xf32> to vector<8x128xf32>
    %27 = vector.shape_cast %24 : vector<8x128xf32> to vector<1x1x8x128xf32>
    tpu.vector_store %arg4[%c0_18, %c1_19, %c0_20, %c0_21], %27 {strides = array<i32>} : memref<1x3x8x128xf32, #tpu.memory_space<vmem>>, vector<1x1x8x128xf32>,
    %c0_22 = arith.constant 0 : index
    %c2 = arith.constant 2 : index
    %c0_23 = arith.constant 0 : index
    %c0_24 = arith.constant 0 : index
    %28 = vector.load %arg4[%c0_22, %c2, %c0_23, %c0_24] : memref<1x3x8x128xf32, #tpu.memory_space<vmem>>, vector<1x1x8x128xf32>
    %29 = vector.shape_cast %28 : vector<1x1x8x128xf32> to vector<8x128xf32>
    %30 = vector.shape_cast %4 : vector<16x128xf32> to vector<2x8x128xf32>
    %cst_25 = arith.constant dense<0.000000e+00> : vector<8x128xf32>
    %31 = vector.multi_reduction <add>, %30, %cst_25 [0] : vector<2x8x128xf32> to vector<8x128xf32>
    %32 = arith.addf %29, %31 : vector<8x128xf32>
    %c0_26 = arith.constant 0 : index
    %c2_27 = arith.constant 2 : index
    %c0_28 = arith.constant 0 : index
    %c0_29 = arith.constant 0 : index
    %33 = vector.load %arg4[%c0_26, %c2_27, %c0_28, %c0_29] : memref<1x3x8x128xf32, #tpu.memory_space<vmem>>, vector<1x1x8x128xf32>
    %34 = vector.shape_cast %33 : vector<1x1x8x128xf32> to vector<8x128xf32>
    %35 = vector.shape_cast %32 : vector<8x128xf32> to vector<1x1x8x128xf32>
    tpu.vector_store %arg4[%c0_26, %c2_27, %c0_28, %c0_29], %35 {strides = array<i32>} : memref<1x3x8x128xf32, #tpu.memory_space<vmem>>, vector<1x1x8x128xf32>,
    return
  }
  func.func @transform_0(%arg0: i32, %arg1: i32) -> (i32, i32) {
    %c1_i32 = arith.constant 1 : i32
    %0 = arith.muli %arg0, %c1_i32 : i32
    %1 = arith.addi %0, %arg1 : i32
    %c0_i32 = arith.constant 0 : i32
    %c0_i32_0 = arith.constant 0 : i32
    return %1, %c0_i32 : i32, i32
  }
  func.func @transform_1(%arg0: i32, %arg1: i32) -> (i32, i32) {
    %c1_i32 = arith.constant 1 : i32
    %0 = arith.muli %arg0, %c1_i32 : i32
    %1 = arith.addi %0, %arg1 : i32
    %c0_i32 = arith.constant 0 : i32
    %c0_i32_0 = arith.constant 0 : i32
    return %1, %c0_i32 : i32, i32
  }
  func.func @transform_2(%arg0: i32, %arg1: i32) -> (i32, i32, i32, i32) {
    %c0_i32 = arith.constant 0 : i32
    %c0_i32_0 = arith.constant 0 : i32
    %c0_i32_1 = arith.constant 0 : i32
    %c0_i32_2 = arith.constant 0 : i32
    return %arg0, %c0_i32, %c0_i32_0, %c0_i32_1 : i32, i32, i32, i32
  }
}

</mosaic_0001>

<bundles_post_ra>
// kernel: tpu_custom_call.1
= control target key start
LH: loop header
LB: loop body
LE: loop exit
PB: predicated region body
PF: predicated region fallthrough
CT: control target
= control target key end

     0   :  { %7 = vsyncpa [#allocation3], 0  ;;  %s269_s0 = inlined_call_operand.hbm [shape: f32[16,128], index: 0, kind: input, shape index: {}]   ;;  %s270_s1 = inlined_call_operand.hbm [shape: f32[16,128], index: 1, kind: input, shape index: {}]   ;;  %s271_s2 = inlined_call_operand.hbm [shape: f32[1,3,8,128], index: 2, kind: output, shape index: {}]  }
   0x1   :  { %8 = vsyncpa [#allocation6], 0 }
   0x2   :  { %9 = vsyncpa [#allocation4], 0  ;;  %s18_s11 = sshll.u32 %s269_s0, 4  ;;  %s231_s12 = smov [#allocation2]   ;;  %s19_s11 = int_to_ptr.hbm [resolvable:$true] %s18_s11 }
   0x3   :  { %s20_s13 = sshll.u32 %s231_s12, 4  ;;  %s35_s16 = sshll.u32 %s270_s1, 4  ;;  %s21_s13 = int_to_ptr.vmem [resolvable:$true] %s20_s13  ;;  %s36_s16 = int_to_ptr.hbm [resolvable:$true] %s35_s16 }
   0x4   :  { %s232_s17 = smov 128   ;;  %s233_s18 = smov 8  }
   0x5   :  { %26 = dma.hbm_to_vmem [thread:$0]  %s19_s11, 256, %s21_s13, [#allocation3], %s232_s17, %s232_s17, %s233_s18  }
   0x6   :  { %s234_s19 = smov [#allocation5]  }
   0x7   :  { %s37_s20 = sshll.u32 %s234_s19, 4  ;;  %s38_s20 = int_to_ptr.vmem [resolvable:$true] %s37_s20 }
   0x8   :  { %43 = dma.hbm_to_vmem [thread:$0]  %s36_s16, 256, %s38_s20, [#allocation6], %s232_s17, %s232_s17, %s233_s18  }
   0x9   :  { %225 = dma.done.wait [#allocation3], 256  }
   0xa   :  { %226 = vsyncadd [#allocation3], 4294967040 }
   0xb   :  { %227 = dma.done.wait [#allocation6], 256  }
   0xc   :  { %228 = vsyncadd [#allocation6], 4294967040  ;;  %v63_v0 = vld [vmem:[#allocation2] sm:$0xff]  ;;  %v64_v1 = vld [vmem:[#allocation2 + $0x8] sm:$0xff]  ;;  %s235_s0 = smov [#allocation7]   ;;  %s125_s23 = sshll.u32 %s271_s2, 4  ;;  %s126_s23 = int_to_ptr.hbm [resolvable:$true] %s125_s23 }
   0xd   :  { %v65_v2 = vld [vmem:[#allocation5] sm:$0xff]  ;;  %v66_v3 = vld [vmem:[#allocation5 + $0x8] sm:$0xff]  ;;  %v67_v4 = vsub.f32 0.0, %v63_v0  ;;  %v68_v5 = vsub.f32 0.0, %v64_v1  ;;  %s123_s1 = sshll.u32 %s235_s0, 4  ;;  %s124_s1 = int_to_ptr.vmem [resolvable:$true] %s123_s1 }
   0xe   :  { %v116_v6 = vadd.f32 %v66_v3, %v65_v2 }
   0xf   :  { %v69_v7 = vmul.f32 1.442695, %v67_v4  ;;  %v71_v8 = vmul.f32 1.442695, %v68_v5 }
  0x10   :  { %118 = vst [vmem:[#allocation7 + $0x10] sm:$0xff] %v116_v6 }
  0x11   :  { %145 = vpow2.f32 %v69_v7 }
  0x12   :  { %147 = vpow2.f32 %v71_v8 }
  0x17   :  { %v146_v9 = vpop.eup %145 }
  0x18   :  { %v148_v10 = vpop.eup %147  ;;  %v73_v11 = vadd.f32 1.0, %v146_v9 }
  0x19   :  { %v74_v12 = vadd.f32 1.0, %v148_v10 }
  0x1a   :  { %149 = vrcp.f32 %v73_v11  ;;  %vm80_vm0 = vweird.f32 %v73_v11  ;;  %v86_v16 = vand.u32 2147483648, %v73_v11  ;;  %v84_v19 = vand.u32 2147483647, %v73_v11 }
  0x1b   :  { %151 = vrcp.f32 %v74_v12  ;;  %v100_v20 = vand.u32 2147483648, %v74_v12  ;;  %vm94_vm2 = vweird.f32 %v74_v12  ;;  %v98_v22 = vand.u32 2147483647, %v74_v12 }
  0x1c   :  { %v87_v24 = vor.u32 1.1754944e-38, %v86_v16  ;;  %vm85_vm5 = vcmp.eq.f32.partialorder %v84_v19, 8.507059e+37 }
  0x1d   :  { %v101_v27 = vor.u32 1.1754944e-38, %v100_v20  ;;  %vm99_vm7 = vcmp.eq.f32.partialorder %v98_v22, 8.507059e+37 }
  0x20   :  { %v150_v13 = vpop.eup %149 }
  0x21   :  { %v152_v14 = vpop.eup %151  ;;  %v76_v15 = vmul.f32 %v150_v13, %v73_v11  ;;  %vm81_vm1 = vweird.f32 %v150_v13 }
  0x22   :  { %v90_v17 = vmul.f32 %v152_v14, %v74_v12  ;;  %vm95_vm3 = vweird.f32 %v152_v14  ;;  %vm82_vm4 = vmor %vm80_vm0, %vm81_vm1 }
  0x23   :  { %v77_v18 = vsub.f32 1.0, %v76_v15  ;;  %vm96_vm6 = vmor %vm94_vm2, %vm95_vm3 }
  0x24   :  { %v91_v21 = vsub.f32 1.0, %v90_v17 }
  0x25   :  { %v78_v23 = vmul.f32 %v150_v13, %v77_v18 }
  0x26   :  { %v92_v25 = vmul.f32 %v152_v14, %v91_v21 }
  0x27   :  { %v79_v26 = vadd.f32 %v150_v13, %v78_v23 }
  0x28   :  { %v93_v28 = vadd.f32 %v152_v14, %v92_v25 }
  0x29   :  { %v83_v29 = vsel %vm82_vm4, %v150_v13, %v79_v26 }
  0x2a   :  { %v88_v30 = vsel %vm85_vm5, %v87_v24, %v83_v29  ;;  %v97_v31 = vsel %vm96_vm6, %v152_v14, %v93_v28 }
  0x2b   :  { %v102_v32 = vsel %vm99_vm7, %v101_v27, %v97_v31  ;;  %v103_v33 = vmul.f32 %v88_v30, %v65_v2 }
  0x2c   :  { %v104_v34 = vmul.f32 %v102_v32, %v66_v3  ;;  %v111_v35 = vadd.f32 %v102_v32, %v88_v30 }
  0x2e   :  { %v106_v36 = vadd.f32 %v104_v34, %v103_v33  ;;  %113 = vst [vmem:[#allocation7 + $0x8] sm:$0xff] %v111_v35 }
  0x30   :  { %108 = vst [vmem:[#allocation7] sm:$0xff] %v106_v36 }
  0x31   :  { %131 = dma.vmem_to_hbm [thread:$0]  %s124_s1, 384, %s126_s23, [#allocation4], %s232_s17, %s232_s17, %s233_s18  }
  0x32   :  { %229 = dma.done.wait [#allocation4], 384  }
  0x33   :  { %230 = vsyncadd [#allocation4], 4294966912 }
  0x34   :  { %136 = vsyncpa [#allocation3], 1 }
  0x35   :  { %137 = vsyncpa [#allocation6], 1 }
  0x36   :  { %138 = vsyncpa [#allocation4], 1 }

</bundles_post_ra>
